<compile_context>
chip_gen: v5e
topology: v5e:2x2
jax: 0.10.0
libtpu: 0.0.40
codegen_flags: <defaults>
</compile_context>

<pallas_src>
from functools import partial

import numpy as np
import jax
import jax.numpy as jnp
from jax.experimental import pallas as pl
from jax.experimental.pallas import tpu as pltpu

ALPHA = 0.5
PROP_LAYERS = 2

# Row indices inside the packed bias/row-vector slab (b_pack).
(B_B1, B_EW1, B_B2, B_GB, B_GTB, B_BA, B_ATW, B_ATB,
 B_UB1, B_UB2, B_UW3, B_UB3) = range(12)


# ----------------------------------------------------------------------------
# Pallas kernel: the entire Classifier.forward for one graph.
# ----------------------------------------------------------------------------
def classifier_kernel(logits_ref, xl_ref, eff_ref, adj_ref, w_ref, b_ref, out_ref,
                      *, feat, hid, d, wrow):
    f32, bf16 = jnp.float32, jnp.bfloat16
    dot = partial(jnp.dot, preferred_element_type=f32)

    def sigmoid(v):  # 1/(1+exp(-v)) with the divide on the EUP
        return pl.reciprocal(1.0 + jnp.exp(-v), approx=True)

    def wblk(name, r_off, rows, cols):  # static slice of the packed bf16 weight slab
        r0 = wrow[name] + r_off
        return w_ref[r0:r0 + rows, :cols]

    def brow(i, width):                  # static slice of the packed f32 bias slab
        return b_ref[i:i + 1, :width]

    o1 = 2 * feat + hid + 16          # fused first-layer output width
    o2 = feat + hid // 2 + 8          # fused second-layer output width (= attention input)
    d3 = 3 * d

    # ---- energy = logsumexp(logits, -1); folded belief propagation (f32 stats)
    logits = logits_ref[...]                                            # f32 (N, hid)
    n = logits.shape[0]
    m = jnp.max(logits, axis=-1, keepdims=True)
    energy = m + jnp.log(jnp.sum(jnp.exp(logits - m), axis=-1, keepdims=True))  # (N,1) f32
    # PROP_LAYERS folded on host into one matrix; single application here.
    energy = dot(eff_ref[...], energy.astype(bf16))                     # f32 (N,1)
    mean = jnp.sum(energy, keepdims=True) / n
    var = jnp.sum((energy - mean) ** 2, keepdims=True) / (n - 1)        # torch.std (unbiased)
    energy = (energy - mean) / (jnp.sqrt(var) + 1e-6)                   # f32 (N,1)

    # ---- fused feature / logit / energy processors (block-diagonal weights) --
    xl = xl_ref[...]                                                    # bf16 (N, feat+hid)
    h1 = dot(xl, wblk('w1', 0, feat + hid, o1))                         # f32 (N, o1)
    # energy branch first layer = rank-1 broadcast (its weight row lives in b_pack)
    h1 = jnp.maximum(h1 + energy * brow(B_EW1, o1) + brow(B_B1, o1), 0.0)
    proc = dot(h1.astype(bf16), wblk('w2', 0, o1, o2)) + brow(B_B2, o2)  # f32 (N, o2)
    px = proc[:, :feat]                                                 # processed_x

    # ---- GCN (dense sym-normalized adjacency) + gcn_transform ----------------
    pxg = dot(px.astype(bf16), wblk('gw', 0, feat, hid))                # f32 (N, hid)
    gx = dot(adj_ref[...], pxg.astype(bf16)) + brow(B_GB, hid)          # f32 (N, hid)
    gx = dot(gx.astype(bf16), wblk('gtw', 0, hid, feat)) + brow(B_GTB, feat)  # f32 (N, feat)

    # ---- attention fusion: single 3d-wide projection output [xt|lt|et] -------
    ta = (dot(gx.astype(bf16), wblk('wa', 0, feat, d3))
          + dot(proc[:, feat:o2].astype(bf16), wblk('wa', feat, o2 - feat, d3))
          + brow(B_BA, d3))                                             # f32 (N, 3d)
    atw = brow(B_ATW, d)
    atb = brow(B_ATB, 1)
    xt, lt, et = ta[:, :d], ta[:, d:2 * d], ta[:, 2 * d:d3]

    def score(t):  # Linear(d, 1) + sigmoid as a lane reduction
        return sigmoid(jnp.sum(t * atw, axis=-1, keepdims=True) + atb)

    sx, sl, se = score(xt), score(lt), score(et)
    inv_tot = pl.reciprocal(sx + sl + se, approx=True)
    fused = (sx * inv_tot) * xt + (sl * inv_tot) * lt + (se * inv_tot) * et

    # ---- fusion MLP head ------------------------------------------------------
    h = jnp.maximum(dot(fused.astype(bf16), wblk('u1', 0, d, 2 * hid)) + brow(B_UB1, 2 * hid), 0.0)
    h = jnp.maximum(dot(h.astype(bf16), wblk('u2', 0, 2 * hid, hid)) + brow(B_UB2, hid), 0.0)
    pred = sigmoid(jnp.sum(h * brow(B_UW3, hid), axis=-1, keepdims=True) + brow(B_UB3, 1))

    # TODO(synk): for large graphs, row-tile the two adjacency matmuls over a
    # ("parallel","arbitrary") grid and emit a lane-dense (1, N) output.
    out_ref[...] = pred.astype(out_ref.dtype)


def classifier_forward(packed, logits, xl, eff_prop, gcn_adj, *, feat, hid):
    w_pack, b_pack, wrow = packed
    n = logits.shape[0]
    d = feat // 2 + hid // 2 + 1
    kernel = partial(classifier_kernel, feat=feat, hid=hid, d=d, wrow=wrow)
    vmem = lambda: pl.BlockSpec(memory_space=pltpu.MemorySpace.VMEM)
    inputs = [logits, xl, eff_prop, gcn_adj, w_pack, b_pack]
    return pl.pallas_call(
        kernel,
        out_shape=jax.ShapeDtypeStruct((n, 1), jnp.float32),
        in_specs=[vmem() for _ in inputs],
        out_specs=vmem(),
        compiler_params=pltpu.CompilerParams(vmem_limit_bytes=32 * 1024 * 1024),
    )(*inputs)


# ----------------------------------------------------------------------------
# Host-side glue: dense adjacency construction, parameter init/packing, reference.
# ----------------------------------------------------------------------------
def build_prop_adj(edge_index, n):
    """Dense version of SparseTensor(row=col, col=row, value=1/deg(col))."""
    row, col = edge_index
    deg = jnp.zeros((n,), jnp.float32).at[col].add(1.0)
    d_norm = jnp.where(deg[col] > 0, 1.0 / deg[col], 0.0)
    return jnp.zeros((n, n), jnp.float32).at[col, row].add(d_norm)


def build_eff_prop(prop_adj, alpha, layers):
    """Fold `layers` propagation steps into one matrix: (a*I + (1-a)*P)^layers."""
    n = prop_adj.shape[0]
    m = alpha * jnp.eye(n, dtype=jnp.float32) + (1.0 - alpha) * prop_adj
    eff = jnp.eye(n, dtype=jnp.float32)
    for _ in range(layers):
        eff = m @ eff
    return eff


def build_gcn_adj(edge_index, n):
    """Dense D^{-1/2}(A+I)D^{-1/2} (PyG GCNConv normalization, self loops)."""
    row, col = edge_index
    loops = jnp.arange(n, dtype=row.dtype)
    row = jnp.concatenate([row, loops])
    col = jnp.concatenate([col, loops])
    deg = jnp.zeros((n,), jnp.float32).at[col].add(1.0)
    dis = jnp.where(deg > 0, 1.0 / jnp.sqrt(deg), 0.0)
    norm = dis[row] * dis[col]
    return jnp.zeros((n, n), jnp.float32).at[col, row].add(norm)


def init_params(key, feat, hid):
    keys = iter(jax.random.split(key, 40))

    def lin(fan_in, fan_out):
        k1, k2 = jax.random.split(next(keys))
        bound = 1.0 / np.sqrt(fan_in)
        w = jax.random.uniform(k1, (fan_in, fan_out), jnp.float32, -bound, bound)
        b = jax.random.uniform(k2, (1, fan_out), jnp.float32, -bound, bound)
        return w, b

    d = feat // 2 + hid // 2 + 1
    fw1, fb1 = lin(feat, 2 * feat)
    fw2, fb2 = lin(2 * feat, feat)
    lw1, lb1 = lin(hid, hid)
    lw2, lb2 = lin(hid, hid // 2)
    ew1, eb1 = lin(1, 16)
    ew2, eb2 = lin(16, 8)
    gw, gb = lin(feat, hid)
    gtw, gtb = lin(hid, feat)
    axw, axb = lin(feat, d)
    alw, alb = lin(hid // 2, d)
    aew, aeb = lin(8, d)
    atw_c, atb = lin(d, 1)
    uw1, ub1 = lin(d, 2 * hid)
    uw2, ub2 = lin(2 * hid, hid)
    uw3_c, ub3 = lin(hid, 1)
    return (fw1, fb1, fw2, fb2, lw1, lb1, lw2, lb2,
            ew1, eb1, ew2, eb2, gw, gb, gtw, gtb,
            axw, axb, alw, alb, aew, aeb, atw_c.T, atb,
            uw1, ub1, uw2, ub2, uw3_c.T, ub3)


def pack_params(params, feat, hid):
    """Build block-diagonal fused weights and pack everything into 2 slabs."""
    (fw1, fb1, fw2, fb2, lw1, lb1, lw2, lb2,
     ew1, eb1, ew2, eb2, gw, gb, gtw, gtb,
     axw, axb, alw, alb, aew, aeb, atw, atb,
     uw1, ub1, uw2, ub2, uw3, ub3) = [np.asarray(p, np.float32) for p in params]
    d = feat // 2 + hid // 2 + 1
    o1 = 2 * feat + hid + 16
    o2 = feat + hid // 2 + 8

    # Block-diagonal fused weights (feature | logit | energy branches).
    w1 = np.zeros((feat + hid, o1), np.float32)   # [x | logits] rows; energy row -> bias slab
    w1[:feat, :2 * feat] = fw1
    w1[feat:, 2 * feat:2 * feat + hid] = lw1

    w2 = np.zeros((o1, o2), np.float32)
    w2[:2 * feat, :feat] = fw2
    w2[2 * feat:2 * feat + hid, feat:feat + hid // 2] = lw2
    w2[2 * feat + hid:, feat + hid // 2:] = ew2

    wa = np.zeros((o2, 3 * d), np.float32)
    wa[:feat, :d] = axw
    wa[feat:feat + hid // 2, d:2 * d] = alw
    wa[feat + hid // 2:, 2 * d:] = aew

    blocks = [("w1", w1), ("w2", w2), ("gw", gw), ("gtw", gtw),
              ("wa", wa), ("u1", uw1), ("u2", uw2)]
    width = max(b.shape[1] for _, b in blocks)
    wrow, r = {}, 0
    for name, b in blocks:
        wrow[name] = r
        r += -(-b.shape[0] // 16) * 16            # 16-row aligned (bf16 sublane packing)
    w_pack = np.zeros((r, width), np.float32)
    for name, b in blocks:
        w_pack[wrow[name]:wrow[name] + b.shape[0], :b.shape[1]] = b

    # Bias / small row-vector slab (kept f32; added to f32 accumulators).
    ew1_row = np.zeros((1, o1), np.float32)
    ew1_row[:, 2 * feat + hid:] = ew1              # Linear(1,16) weight as a broadcast row
    rows = [np.concatenate([fb1, lb1, eb1], 1), ew1_row,
            np.concatenate([fb2, lb2, eb2], 1), gb, gtb,
            np.concatenate([axb, alb, aeb], 1), atw, atb,
            ub1, ub2, uw3, ub3]
    b_pack = np.zeros((len(rows), width), np.float32)
    for i, rv in enumerate(rows):
        b_pack[i:i + 1, :rv.shape[1]] = rv

    return (jnp.asarray(w_pack, jnp.bfloat16), jnp.asarray(b_pack, jnp.float32), wrow)


def ref_forward(params, logits, x, prop_adj, gcn_adj):
    (fw1, fb1, fw2, fb2, lw1, lb1, lw2, lb2,
     ew1, eb1, ew2, eb2, gw, gb, gtw, gtb,
     axw, axb, alw, alb, aew, aeb, atw, atb,
     uw1, ub1, uw2, ub2, uw3, ub3) = params
    n = logits.shape[0]
    sig = lambda v: 1.0 / (1.0 + jnp.exp(-v))

    m = jnp.max(logits, axis=-1, keepdims=True)
    e = m + jnp.log(jnp.sum(jnp.exp(logits - m), axis=-1, keepdims=True))
    for _ in range(PROP_LAYERS):
        e = e * ALPHA + prop_adj @ e * (1.0 - ALPHA)
    mean = jnp.sum(e) / n
    std = jnp.sqrt(jnp.sum((e - mean) ** 2) / (n - 1))
    e = (e - mean) / (std + 1e-6)

    px = jnp.maximum(x @ fw1 + fb1, 0.0) @ fw2 + fb2
    pl_ = jnp.maximum(logits @ lw1 + lb1, 0.0) @ lw2 + lb2
    pe = jnp.maximum(e * ew1 + eb1, 0.0) @ ew2 + eb2

    gx = gcn_adj @ (px @ gw) + gb
    gx = gx @ gtw + gtb

    xt = gx @ axw + axb
    lt = pl_ @ alw + alb
    et = pe @ aew + aeb
    attn = lambda t: sig(jnp.sum(t * atw, axis=-1, keepdims=True) + atb)
    xw_, lw_, ew_ = attn(xt), attn(lt), attn(et)
    tot = xw_ + lw_ + ew_
    fused = (xw_ / tot) * xt + (lw_ / tot) * lt + (ew_ / tot) * et

    h = jnp.maximum(fused @ uw1 + ub1, 0.0)
    h = jnp.maximum(h @ uw2 + ub2, 0.0)
    return sig(jnp.sum(h * uw3, axis=-1, keepdims=True) + ub3)


if __name__ == "__main__":
    N, FEAT, HID = 8, 16, 8  # nodes, in_features, hidden_channels

    key = jax.random.PRNGKey(0)
    k_logits, k_x, k_params = jax.random.split(key, 3)
    logits = jax.random.normal(k_logits, (N, HID), jnp.float32)
    x = jax.random.normal(k_x, (N, FEAT), jnp.float32)

    # Undirected ring graph: edges i <-> (i+1) % N.
    src = np.arange(N, dtype=np.int32)
    dst = ((src + 1) % N).astype(np.int32)
    row = jnp.asarray(np.concatenate([src, dst]))
    col = jnp.asarray(np.concatenate([dst, src]))
    edge_index = (row, col)

    prop_adj = build_prop_adj(edge_index, N)
    eff_prop = build_eff_prop(prop_adj, ALPHA, PROP_LAYERS)    # propagation folded on host
    gcn_adj = build_gcn_adj(edge_index, N)

    params = init_params(k_params, FEAT, HID)
    packed = pack_params(params, FEAT, HID)

    # bf16 inputs for the MXU path; logits also passed in f32 for the logsumexp.
    xl = jnp.concatenate([x, logits], axis=-1).astype(jnp.bfloat16)
    out = classifier_forward(packed, logits, xl,
                             eff_prop.astype(jnp.bfloat16),
                             gcn_adj.astype(jnp.bfloat16),
                             feat=FEAT, hid=HID)
    out = jax.block_until_ready(out)

    # predictions = fusion(...).squeeze()[mask]   (mask indexing is host-side glue)
    mask = np.array([True, False, True, True, False, True, False, True])
    preds = jnp.squeeze(out, axis=-1)[jnp.asarray(mask)]

    ref = ref_forward(params, logits, x, prop_adj, gcn_adj)
    np.testing.assert_allclose(np.asarray(out), np.asarray(ref), rtol=2e-2, atol=2e-2)
    assert preds.shape == (int(mask.sum()),)
    assert bool(jnp.all(jnp.isfinite(preds)))
    print("KERNEL_OK")
</pallas_src>

<mosaic_0001>
module attributes {stable_mosaic.version = 11 : i64} {
  func.func @classifier_kernel(%arg0: memref<8x8xf32, #tpu.memory_space<vmem>>, %arg1: memref<8x24xbf16, #tpu.memory_space<vmem>>, %arg2: memref<8x8xbf16, #tpu.memory_space<vmem>>, %arg3: memref<8x8xbf16, #tpu.memory_space<vmem>>, %arg4: memref<192x56xbf16, #tpu.memory_space<vmem>>, %arg5: memref<12x56xf32, #tpu.memory_space<vmem>>, %arg6: memref<8x1xf32, #tpu.memory_space<vmem>>) attributes {dimension_semantics = [], scalar_prefetch = 0 : i64, scratch_operands = 0 : i64, tpu.core_type = #tpu.core_type<tc>} {
    %c0 = arith.constant 0 : index
    %c0_0 = arith.constant 0 : index
    %0 = vector.load %arg0[%c0, %c0_0] : memref<8x8xf32, #tpu.memory_space<vmem>>, vector<8x8xf32>
    %cst = arith.constant dense<0xFF800000> : vector<8xf32>
    %1 = vector.multi_reduction <maximumf>, %0, %cst [1] : vector<8x8xf32> to vector<8xf32>
    %2 = vector.shape_cast %1 : vector<8xf32> to vector<8x1xf32>
    %3 = vector.broadcast %2 : vector<8x1xf32> to vector<8x8xf32>
    %4 = arith.subf %0, %3 : vector<8x8xf32>
    %5 = math.exp %4 : vector<8x8xf32>
    %cst_1 = arith.constant dense<0.000000e+00> : vector<8xf32>
    %6 = vector.multi_reduction <add>, %5, %cst_1 [1] : vector<8x8xf32> to vector<8xf32>
    %7 = vector.shape_cast %6 : vector<8xf32> to vector<8x1xf32>
    %8 = math.log %7 : vector<8x1xf32>
    %9 = arith.addf %2, %8 : vector<8x1xf32>
    %c0_2 = arith.constant 0 : index
    %c0_3 = arith.constant 0 : index
    %10 = vector.load %arg2[%c0_2, %c0_3] : memref<8x8xbf16, #tpu.memory_space<vmem>>, vector<8x8xbf16>
    %11 = arith.truncf %9 : vector<8x1xf32> to vector<8x1xbf16>
    %cst_4 = arith.constant dense<0.000000e+00> : vector<8x1xf32>
    %12 = tpu.matmul %10, %11, %cst_4 {dimension_numbers = #tpu.dot_dimension_numbers<[1], [0], [0], [1], [0, 0, 1, 1], [], []>} : vector<8x8xbf16>, vector<8x1xbf16>, vector<8x1xf32> -> vector<8x1xf32>
    %13 = vector.shape_cast %12 : vector<8x1xf32> to vector<1x8x1xf32>
    %cst_5 = arith.constant dense<0.000000e+00> : vector<1xf32>
    %14 = vector.multi_reduction <add>, %13, %cst_5 [1, 2] : vector<1x8x1xf32> to vector<1xf32>
    %15 = vector.shape_cast %14 : vector<1xf32> to vector<1x1x1xf32>
    %16 = vector.extract %15[0, 0, 0] : f32 from vector<1x1x1xf32>
    %17 = vector.broadcast %16 : f32 to vector<1x1xf32>
    %cst_6 = arith.constant 8.000000e+00 : f32
    %18 = vector.broadcast %cst_6 : f32 to vector<1x1xf32>
    %19 = arith.divf %17, %18 : vector<1x1xf32>
    %20 = vector.broadcast %19 : vector<1x1xf32> to vector<8x1xf32>
    %21 = arith.subf %12, %20 : vector<8x1xf32>
    %22 = arith.mulf %21, %21 : vector<8x1xf32>
    %23 = vector.shape_cast %22 : vector<8x1xf32> to vector<1x8x1xf32>
    %cst_7 = arith.constant dense<0.000000e+00> : vector<1xf32>
    %24 = vector.multi_reduction <add>, %23, %cst_7 [1, 2] : vector<1x8x1xf32> to vector<1xf32>
    %25 = vector.shape_cast %24 : vector<1xf32> to vector<1x1x1xf32>
    %26 = vector.extract %25[0, 0, 0] : f32 from vector<1x1x1xf32>
    %27 = vector.broadcast %26 : f32 to vector<1x1xf32>
    %cst_8 = arith.constant 7.000000e+00 : f32
    %28 = vector.broadcast %cst_8 : f32 to vector<1x1xf32>
    %29 = arith.divf %27, %28 : vector<1x1xf32>
    %30 = vector.broadcast %19 : vector<1x1xf32> to vector<8x1xf32>
    %31 = arith.subf %12, %30 : vector<8x1xf32>
    %32 = math.sqrt %29 : vector<1x1xf32>
    %cst_9 = arith.constant 9.99999997E-7 : f32
    %33 = vector.broadcast %cst_9 : f32 to vector<1x1xf32>
    %34 = arith.addf %32, %33 : vector<1x1xf32>
    %35 = vector.broadcast %34 : vector<1x1xf32> to vector<8x1xf32>
    %36 = arith.divf %31, %35 : vector<8x1xf32>
    %c0_10 = arith.constant 0 : index
    %c0_11 = arith.constant 0 : index
    %37 = vector.load %arg1[%c0_10, %c0_11] : memref<8x24xbf16, #tpu.memory_space<vmem>>, vector<8x24xbf16>
    %c0_12 = arith.constant 0 : index
    %c0_13 = arith.constant 0 : index
    %38 = vector.load %arg4[%c0_12, %c0_13] : memref<192x56xbf16, #tpu.memory_space<vmem>>, vector<24x56xbf16>
    %cst_14 = arith.constant dense<0.000000e+00> : vector<8x56xf32>
    %39 = tpu.matmul %37, %38, %cst_14 {dimension_numbers = #tpu.dot_dimension_numbers<[1], [0], [0], [1], [0, 0, 1, 1], [], []>} : vector<8x24xbf16>, vector<24x56xbf16>, vector<8x56xf32> -> vector<8x56xf32>
    %c1 = arith.constant 1 : index
    %c0_15 = arith.constant 0 : index
    %40 = vector.load %arg5[%c1, %c0_15] : memref<12x56xf32, #tpu.memory_space<vmem>>, vector<1x56xf32>
    %41 = vector.broadcast %36 : vector<8x1xf32> to vector<8x56xf32>
    %42 = vector.broadcast %40 : vector<1x56xf32> to vector<8x56xf32>
    %43 = arith.mulf %41, %42 : vector<8x56xf32>
    %44 = arith.addf %39, %43 : vector<8x56xf32>
    %c0_16 = arith.constant 0 : index
    %c0_17 = arith.constant 0 : index
    %45 = vector.load %arg5[%c0_16, %c0_17] : memref<12x56xf32, #tpu.memory_space<vmem>>, vector<1x56xf32>
    %46 = vector.broadcast %45 : vector<1x56xf32> to vector<8x56xf32>
    %47 = arith.addf %44, %46 : vector<8x56xf32>
    %cst_18 = arith.constant 0.000000e+00 : f32
    %48 = vector.broadcast %cst_18 : f32 to vector<8x56xf32>
    %49 = arith.maximumf %47, %48 : vector<8x56xf32>
    %50 = arith.truncf %49 : vector<8x56xf32> to vector<8x56xbf16>
    %c32 = arith.constant 32 : index
    %c0_19 = arith.constant 0 : index
    %51 = vector.load %arg4[%c32, %c0_19] : memref<192x56xbf16, #tpu.memory_space<vmem>>, vector<56x28xbf16>
    %cst_20 = arith.constant dense<0.000000e+00> : vector<8x28xf32>
    %52 = tpu.matmul %50, %51, %cst_20 {dimension_numbers = #tpu.dot_dimension_numbers<[1], [0], [0], [1], [0, 0, 1, 1], [], []>} : vector<8x56xbf16>, vector<56x28xbf16>, vector<8x28xf32> -> vector<8x28xf32>
    %c2 = arith.constant 2 : index
    %c0_21 = arith.constant 0 : index
    %53 = vector.load %arg5[%c2, %c0_21] : memref<12x56xf32, #tpu.memory_space<vmem>>, vector<1x28xf32>
    %54 = vector.broadcast %53 : vector<1x28xf32> to vector<8x28xf32>
    %55 = arith.addf %52, %54 : vector<8x28xf32>
    %56 = vector.extract_strided_slice %55 {offsets = [0, 0], sizes = [8, 16], strides = [1, 1]} : vector<8x28xf32> to vector<8x16xf32>
    %57 = arith.truncf %56 : vector<8x16xf32> to vector<8x16xbf16>
    %c96 = arith.constant 96 : index
    %c0_22 = arith.constant 0 : index
    %58 = vector.load %arg4[%c96, %c0_22] : memref<192x56xbf16, #tpu.memory_space<vmem>>, vector<16x8xbf16>
    %cst_23 = arith.constant dense<0.000000e+00> : vector<8x8xf32>
    %59 = tpu.matmul %57, %58, %cst_23 {dimension_numbers = #tpu.dot_dimension_numbers<[1], [0], [0], [1], [0, 0, 1, 1], [], []>} : vector<8x16xbf16>, vector<16x8xbf16>, vector<8x8xf32> -> vector<8x8xf32>
    %c0_24 = arith.constant 0 : index
    %c0_25 = arith.constant 0 : index
    %60 = vector.load %arg3[%c0_24, %c0_25] : memref<8x8xbf16, #tpu.memory_space<vmem>>, vector<8x8xbf16>
    %61 = arith.truncf %59 : vector<8x8xf32> to vector<8x8xbf16>
    %cst_26 = arith.constant dense<0.000000e+00> : vector<8x8xf32>
    %62 = tpu.matmul %60, %61, %cst_26 {dimension_numbers = #tpu.dot_dimension_numbers<[1], [0], [0], [1], [0, 0, 1, 1], [], []>} : vector<8x8xbf16>, vector<8x8xbf16>, vector<8x8xf32> -> vector<8x8xf32>
    %c3 = arith.constant 3 : index
    %c0_27 = arith.constant 0 : index
    %63 = vector.load %arg5[%c3, %c0_27] : memref<12x56xf32, #tpu.memory_space<vmem>>, vector<1x8xf32>
    %64 = vector.broadcast %63 : vector<1x8xf32> to vector<8x8xf32>
    %65 = arith.addf %62, %64 : vector<8x8xf32>
    %66 = arith.truncf %65 : vector<8x8xf32> to vector<8x8xbf16>
    %c112 = arith.constant 112 : index
    %c0_28 = arith.constant 0 : index
    %67 = vector.load %arg4[%c112, %c0_28] : memref<192x56xbf16, #tpu.memory_space<vmem>>, vector<8x16xbf16>
    %cst_29 = arith.constant dense<0.000000e+00> : vector<8x16xf32>
    %68 = tpu.matmul %66, %67, %cst_29 {dimension_numbers = #tpu.dot_dimension_numbers<[1], [0], [0], [1], [0, 0, 1, 1], [], []>} : vector<8x8xbf16>, vector<8x16xbf16>, vector<8x16xf32> -> vector<8x16xf32>
    %c4 = arith.constant 4 : index
    %c0_30 = arith.constant 0 : index
    %69 = vector.load %arg5[%c4, %c0_30] : memref<12x56xf32, #tpu.memory_space<vmem>>, vector<1x16xf32>
    %70 = vector.broadcast %69 : vector<1x16xf32> to vector<8x16xf32>
    %71 = arith.addf %68, %70 : vector<8x16xf32>
    %72 = arith.truncf %71 : vector<8x16xf32> to vector<8x16xbf16>
    %c128 = arith.constant 128 : index
    %c0_31 = arith.constant 0 : index
    %73 = vector.load %arg4[%c128, %c0_31] : memref<192x56xbf16, #tpu.memory_space<vmem>>, vector<16x39xbf16>
    %cst_32 = arith.constant dense<0.000000e+00> : vector<8x39xf32>
    %74 = tpu.matmul %72, %73, %cst_32 {dimension_numbers = #tpu.dot_dimension_numbers<[1], [0], [0], [1], [0, 0, 1, 1], [], []>} : vector<8x16xbf16>, vector<16x39xbf16>, vector<8x39xf32> -> vector<8x39xf32>
    %75 = vector.extract_strided_slice %55 {offsets = [0, 16], sizes = [8, 12], strides = [1, 1]} : vector<8x28xf32> to vector<8x12xf32>
    %76 = arith.truncf %75 : vector<8x12xf32> to vector<8x12xbf16>
    %c144 = arith.constant 144 : index
    %c0_33 = arith.constant 0 : index
    %77 = vector.load %arg4[%c144, %c0_33] : memref<192x56xbf16, #tpu.memory_space<vmem>>, vector<12x39xbf16>
    %cst_34 = arith.constant dense<0.000000e+00> : vector<8x39xf32>
    %78 = tpu.matmul %76, %77, %cst_34 {dimension_numbers = #tpu.dot_dimension_numbers<[1], [0], [0], [1], [0, 0, 1, 1], [], []>} : vector<8x12xbf16>, vector<12x39xbf16>, vector<8x39xf32> -> vector<8x39xf32>
    %79 = arith.addf %74, %78 : vector<8x39xf32>
    %c5 = arith.constant 5 : index
    %c0_35 = arith.constant 0 : index
    %80 = vector.load %arg5[%c5, %c0_35] : memref<12x56xf32, #tpu.memory_space<vmem>>, vector<1x39xf32>
    %81 = vector.broadcast %80 : vector<1x39xf32> to vector<8x39xf32>
    %82 = arith.addf %79, %81 : vector<8x39xf32>
    %c6 = arith.constant 6 : index
    %c0_36 = arith.constant 0 : index
    %83 = vector.load %arg5[%c6, %c0_36] : memref<12x56xf32, #tpu.memory_space<vmem>>, vector<1x13xf32>
    %c7 = arith.constant 7 : index
    %c0_37 = arith.constant 0 : index
    %84 = vector.load %arg5[%c7, %c0_37] : memref<12x56xf32, #tpu.memory_space<vmem>>, vector<1x1xf32>
    %85 = vector.extract_strided_slice %82 {offsets = [0, 0], sizes = [8, 13], strides = [1, 1]} : vector<8x39xf32> to vector<8x13xf32>
    %86 = vector.extract_strided_slice %82 {offsets = [0, 13], sizes = [8, 13], strides = [1, 1]} : vector<8x39xf32> to vector<8x13xf32>
    %87 = vector.extract_strided_slice %82 {offsets = [0, 26], sizes = [8, 13], strides = [1, 1]} : vector<8x39xf32> to vector<8x13xf32>
    %88 = vector.broadcast %83 : vector<1x13xf32> to vector<8x13xf32>
    %89 = arith.mulf %85, %88 : vector<8x13xf32>
    %cst_38 = arith.constant dense<0.000000e+00> : vector<8xf32>
    %90 = vector.multi_reduction <add>, %89, %cst_38 [1] : vector<8x13xf32> to vector<8xf32>
    %91 = vector.shape_cast %90 : vector<8xf32> to vector<8x1xf32>
    %92 = vector.broadcast %84 : vector<1x1xf32> to vector<8x1xf32>
    %93 = arith.addf %91, %92 : vector<8x1xf32>
    %cst_39 = arith.constant 0.000000e+00 : f32
    %94 = vector.broadcast %cst_39 : f32 to vector<8x1xf32>
    %95 = arith.subf %94, %93 : vector<8x1xf32>
    %96 = math.exp %95 : vector<8x1xf32>
    %cst_40 = arith.constant 1.000000e+00 : f32
    %97 = vector.broadcast %cst_40 : f32 to vector<8x1xf32>
    %98 = arith.addf %97, %96 : vector<8x1xf32>
    %99 = tpu.reciprocal %98 {approx = true} : vector<8x1xf32> -> vector<8x1xf32>
    %100 = vector.broadcast %83 : vector<1x13xf32> to vector<8x13xf32>
    %101 = arith.mulf %86, %100 : vector<8x13xf32>
    %cst_41 = arith.constant dense<0.000000e+00> : vector<8xf32>
    %102 = vector.multi_reduction <add>, %101, %cst_41 [1] : vector<8x13xf32> to vector<8xf32>
    %103 = vector.shape_cast %102 : vector<8xf32> to vector<8x1xf32>
    %104 = vector.broadcast %84 : vector<1x1xf32> to vector<8x1xf32>
    %105 = arith.addf %103, %104 : vector<8x1xf32>
    %cst_42 = arith.constant 0.000000e+00 : f32
    %106 = vector.broadcast %cst_42 : f32 to vector<8x1xf32>
    %107 = arith.subf %106, %105 : vector<8x1xf32>
    %108 = math.exp %107 : vector<8x1xf32>
    %cst_43 = arith.constant 1.000000e+00 : f32
    %109 = vector.broadcast %cst_43 : f32 to vector<8x1xf32>
    %110 = arith.addf %109, %108 : vector<8x1xf32>
    %111 = tpu.reciprocal %110 {approx = true} : vector<8x1xf32> -> vector<8x1xf32>
    %112 = vector.broadcast %83 : vector<1x13xf32> to vector<8x13xf32>
    %113 = arith.mulf %87, %112 : vector<8x13xf32>
    %cst_44 = arith.constant dense<0.000000e+00> : vector<8xf32>
    %114 = vector.multi_reduction <add>, %113, %cst_44 [1] : vector<8x13xf32> to vector<8xf32>
    %115 = vector.shape_cast %114 : vector<8xf32> to vector<8x1xf32>
    %116 = vector.broadcast %84 : vector<1x1xf32> to vector<8x1xf32>
    %117 = arith.addf %115, %116 : vector<8x1xf32>
    %cst_45 = arith.constant 0.000000e+00 : f32
    %118 = vector.broadcast %cst_45 : f32 to vector<8x1xf32>
    %119 = arith.subf %118, %117 : vector<8x1xf32>
    %120 = math.exp %119 : vector<8x1xf32>
    %cst_46 = arith.constant 1.000000e+00 : f32
    %121 = vector.broadcast %cst_46 : f32 to vector<8x1xf32>
    %122 = arith.addf %121, %120 : vector<8x1xf32>
    %123 = tpu.reciprocal %122 {approx = true} : vector<8x1xf32> -> vector<8x1xf32>
    %124 = arith.addf %99, %111 : vector<8x1xf32>
    %125 = arith.addf %124, %123 : vector<8x1xf32>
    %126 = tpu.reciprocal %125 {approx = true} : vector<8x1xf32> -> vector<8x1xf32>
    %127 = arith.mulf %99, %126 : vector<8x1xf32>
    %128 = vector.broadcast %127 : vector<8x1xf32> to vector<8x13xf32>
    %129 = arith.mulf %128, %85 : vector<8x13xf32>
    %130 = arith.mulf %111, %126 : vector<8x1xf32>
    %131 = vector.broadcast %130 : vector<8x1xf32> to vector<8x13xf32>
    %132 = arith.mulf %131, %86 : vector<8x13xf32>
    %133 = arith.addf %129, %132 : vector<8x13xf32>
    %134 = arith.mulf %123, %126 : vector<8x1xf32>
    %135 = vector.broadcast %134 : vector<8x1xf32> to vector<8x13xf32>
    %136 = arith.mulf %135, %87 : vector<8x13xf32>
    %137 = arith.addf %133, %136 : vector<8x13xf32>
    %138 = arith.truncf %137 : vector<8x13xf32> to vector<8x13xbf16>
    %c160 = arith.constant 160 : index
    %c0_47 = arith.constant 0 : index
    %139 = vector.load %arg4[%c160, %c0_47] : memref<192x56xbf16, #tpu.memory_space<vmem>>, vector<13x16xbf16>
    %cst_48 = arith.constant dense<0.000000e+00> : vector<8x16xf32>
    %140 = tpu.matmul %138, %139, %cst_48 {dimension_numbers = #tpu.dot_dimension_numbers<[1], [0], [0], [1], [0, 0, 1, 1], [], []>} : vector<8x13xbf16>, vector<13x16xbf16>, vector<8x16xf32> -> vector<8x16xf32>
    %c8 = arith.constant 8 : index
    %c0_49 = arith.constant 0 : index
    %141 = vector.load %arg5[%c8, %c0_49] : memref<12x56xf32, #tpu.memory_space<vmem>>, vector<1x16xf32>
    %142 = vector.broadcast %141 : vector<1x16xf32> to vector<8x16xf32>
    %143 = arith.addf %140, %142 : vector<8x16xf32>
    %cst_50 = arith.constant 0.000000e+00 : f32
    %144 = vector.broadcast %cst_50 : f32 to vector<8x16xf32>
    %145 = arith.maximumf %143, %144 : vector<8x16xf32>
    %146 = arith.truncf %145 : vector<8x16xf32> to vector<8x16xbf16>
    %c176 = arith.constant 176 : index
    %c0_51 = arith.constant 0 : index
    %147 = vector.load %arg4[%c176, %c0_51] : memref<192x56xbf16, #tpu.memory_space<vmem>>, vector<16x8xbf16>
    %cst_52 = arith.constant dense<0.000000e+00> : vector<8x8xf32>
    %148 = tpu.matmul %146, %147, %cst_52 {dimension_numbers = #tpu.dot_dimension_numbers<[1], [0], [0], [1], [0, 0, 1, 1], [], []>} : vector<8x16xbf16>, vector<16x8xbf16>, vector<8x8xf32> -> vector<8x8xf32>
    %c9 = arith.constant 9 : index
    %c0_53 = arith.constant 0 : index
    %149 = vector.load %arg5[%c9, %c0_53] : memref<12x56xf32, #tpu.memory_space<vmem>>, vector<1x8xf32>
    %150 = vector.broadcast %149 : vector<1x8xf32> to vector<8x8xf32>
    %151 = arith.addf %148, %150 : vector<8x8xf32>
    %cst_54 = arith.constant 0.000000e+00 : f32
    %152 = vector.broadcast %cst_54 : f32 to vector<8x8xf32>
    %153 = arith.maximumf %151, %152 : vector<8x8xf32>
    %c10 = arith.constant 10 : index
    %c0_55 = arith.constant 0 : index
    %154 = vector.load %arg5[%c10, %c0_55] : memref<12x56xf32, #tpu.memory_space<vmem>>, vector<1x8xf32>
    %155 = vector.broadcast %154 : vector<1x8xf32> to vector<8x8xf32>
    %156 = arith.mulf %153, %155 : vector<8x8xf32>
    %cst_56 = arith.constant dense<0.000000e+00> : vector<8xf32>
    %157 = vector.multi_reduction <add>, %156, %cst_56 [1] : vector<8x8xf32> to vector<8xf32>
    %158 = vector.shape_cast %157 : vector<8xf32> to vector<8x1xf32>
    %c11 = arith.constant 11 : index
    %c0_57 = arith.constant 0 : index
    %159 = vector.load %arg5[%c11, %c0_57] : memref<12x56xf32, #tpu.memory_space<vmem>>, vector<1x1xf32>
    %160 = vector.broadcast %159 : vector<1x1xf32> to vector<8x1xf32>
    %161 = arith.addf %158, %160 : vector<8x1xf32>
    %cst_58 = arith.constant 0.000000e+00 : f32
    %162 = vector.broadcast %cst_58 : f32 to vector<8x1xf32>
    %163 = arith.subf %162, %161 : vector<8x1xf32>
    %164 = math.exp %163 : vector<8x1xf32>
    %cst_59 = arith.constant 1.000000e+00 : f32
    %165 = vector.broadcast %cst_59 : f32 to vector<8x1xf32>
    %166 = arith.addf %165, %164 : vector<8x1xf32>
    %167 = tpu.reciprocal %166 {approx = true} : vector<8x1xf32> -> vector<8x1xf32>
    %c0_60 = arith.constant 0 : index
    %c0_61 = arith.constant 0 : index
    %168 = vector.load %arg6[%c0_60, %c0_61] : memref<8x1xf32, #tpu.memory_space<vmem>>, vector<8x1xf32>
    tpu.vector_store %arg6[%c0_60, %c0_61], %167 {strides = array<i32>} : memref<8x1xf32, #tpu.memory_space<vmem>>, vector<8x1xf32>,
    return
  }
}

</mosaic_0001>

<bundles_post_ra>
// kernel: tpu_custom_call.1
= control target key start
LH: loop header
LB: loop body
LE: loop exit
PB: predicated region body
PF: predicated region fallthrough
CT: control target
= control target key end

     0   :  { %vm25_vm0 = vcmask 64512   ;;  %vm43_vm1 = vcmask 1043456   ;;  %vm60_vm2 = vcmask 7168   ;;  %v633_v24 = vmov 8.0   ;;  %s636_s24 = smov 112   ;;  %s638_s13 = smov 13   ;;  %s810_s0 = inlined_call_operand.vmem [shape: f32[8,8], index: 0, kind: input, shape index: {}]   ;;  %s811_s2 = inlined_call_operand.vmem [shape: bf16[8,8], index: 2, kind: input, shape index: {}]   ;;  %s812_s4 = inlined_call_operand.vmem [shape: bf16[192,56], index: 4, kind: input, shape index: {}]   ;;  %s813_s1 = inlined_call_operand.vmem [shape: bf16[8,24], index: 1, kind: input, shape index: {}]   ;;  %s814_s5 = inlined_call_operand.vmem [shape: f32[12,56], index: 5, kind: input, shape index: {}]   ;;  %s815_s3 = inlined_call_operand.vmem [shape: bf16[8,8], index: 3, kind: input, shape index: {}]   ;;  %s816_s6 = inlined_call_operand.vmem [shape: f32[8,1], index: 6, kind: output, shape index: {}]  }
   0x1   :  { %v24_v0 = vld [vmem:[%s810_s0] sm:$0xff]  ;;  %v132_v36 = vld [vmem:[%s812_s4 + $0x8] sm:$0xf]  ;;  %vm150_vm4 = vcmask 195584   ;;  %v634_v49 = vmov 7.0   ;;  %v635_v52 = vmov 0  }
   0x2   :  { %v26_v1 = vsel %vm25_vm0, %v24_v0, -inf  ;;  %v38_v13 = vld [vmem:[%s811_s2] sm:$0xf]  ;;  %v146_v37 = vunpack.c.l.b16 %v132_v36  ;;  %588 = vset.pattern.permute.xlu2 %v635_v52  ;;  %590 = vset.pattern.permute.xlu1 %v635_v52  ;;  %vm205_vm12 = vcmask 457728   ;;  %v572_v36 = vld [vmem:[%s812_s4 + $0x48] sm:$0x30] }
   0x3   :  { %27 = vmax.xlane.f32.xlu0 %v26_v1  ;;  %v566_v47 = vld [vmem:[%s812_s4] sm:$0xff]  ;;  %vm314_vm13 = vcmask 1045504   ;;  %vm234_vm14 = vcmask 130048   ;;  %vm310_vm15 = vcmask 97280   ;;  %s639_s14 = smov 26   ;;  %s640_s19 = smov 115  }
   0x4   :  { %v148_v38 = vpack.c.b16 %v146_v37, %v146_v37  ;;  %v129_v48 = vld [vmem:[%s813_s1] sm:$0xf]  ;;  %589 = vset.pattern.permute.xlu0 %v635_v52  ;;  %s641_s20 = smov 102  }
   0x6   :  { %v155_v39 = vsel %vm43_vm1, %v148_v38, 0 }
   0x7   :  { %163 = vmatpush.bf16.msra.mxu1 %v155_v39  ;;  %v593_v39 = vld [vmem:[%s814_s5 + $0x2] ss:$0 sm:$0xff] }
   0xb   :  { %164 = vmatpush.bf16.msra.mxu1 %v566_v47  ;;  %v637_v47 = vmov 65535  }
   0xe   :  { %525 = vmatmul.msk.bf16.vlgmr.msra.gmra.mxu1 %vm150_vm4, %v129_v48  ;;  %v454_v48 = vsel %vm314_vm13, 4294967295, %v637_v47 }
  0x76   :  { %v28_v2 = vpop.xlane.xlu0 %27 }
  0x77   :  { %v29_v3 = vsub.f32 %v24_v0, %v28_v2 }
  0x79   :  { %v30_v4 = vmul.f32 1.442695, %v29_v3 }
  0x7b   :  { %603 = vpow2.f32 %v30_v4 }
  0x81   :  { %v604_v5 = vpop.eup %603 }
  0x82   :  { %v32_v6 = vsel %vm25_vm0, %v604_v5, 0.0 }
  0x83   :  { %33 = vadd.xlane.f32.xlu0 %v32_v6 }
  0xf6   :  { %v34_v7 = vpop.xlane.xlu0 %33 }
  0xf7   :  { %605 = vlog2.f32 %v34_v7 }
  0xf8   :  { %607 = vrcp.f32 %v633_v24  ;;  %v568_v24 = vld [vmem:[%s812_s4 + $0x18] sm:$0xff] }
  0xf9   :  { %609 = vrcp.f32 %v634_v49 }
  0xfd   :  { %v606_v8 = vpop.eup %605 }
  0xfe   :  { %v36_v9 = vmul.f32 0.6931472, %v606_v8  ;;  %v608_v25 = vpop.eup %607 }
  0xff   :  { %v73_v26 = vmul.f32 8.0, %v608_v25  ;;  %vm77_vm3 = vweird.f32 %v608_v25  ;;  %v610_v50 = vpop.eup %609 }
 0x100   :  { %v37_v10 = vadd.f32 %v36_v9, %v28_v2  ;;  %v94_v51 = vmul.f32 7.0, %v610_v50  ;;  %vm98_vm5 = vweird.f32 %v610_v50 }
 0x101   :  { %v74_v27 = vsub.f32 1.0, %v73_v26  ;;  %v591_v26 = vld [vmem:[%s814_s5 + $0x1] ss:$0 sm:$0xff] }
 0x102   :  { %v39_v11 = vpack.c.bf16 %v37_v10, %v37_v10  ;;  %v95_v53 = vsub.f32 1.0, %v94_v51 }
 0x103   :  { %v75_v28 = vmul.f32 %v608_v25, %v74_v27 }
 0x104   :  { %v45_v12 = vsel %vm43_vm1, %v39_v11, 0  ;;  %v96_v54 = vmul.f32 %v610_v50, %v95_v53 }
 0x105   :  { %54 = vmatpush.bf16.msra.mxu0 %v45_v12  ;;  %v76_v29 = vadd.f32 %v608_v25, %v75_v28  ;;  %v592_v28 = vld [vmem:[%s814_s5] ss:$0 sm:$0xff] }
 0x106   :  { %v97_v55 = vadd.f32 %v610_v50, %v96_v54 }
 0x107   :  { %v78_v30 = vsel %vm77_vm3, %v608_v25, %v76_v29  ;;  %v567_v25 = vld [vmem:[%s812_s4 + $0x10] sm:$0xff]  ;;  %vm453_vm3 = vcmask 1046528  }
 0x108   :  { %520 = vmatmul.msk.bf16.vlgmr.msra.gmra.mxu0 %vm25_vm0, %v38_v13  ;;  %v99_v56 = vsel %vm98_vm5, %v610_v50, %v97_v55  ;;  %v455_v50 = vsel %vm453_vm3, %v454_v48, 0  ;;  %v251_v55 = vld [vmem:[%s815_s3] sm:$0xf] }
 0x185   :  { %v56_v14 = vpop.f32.mrf.mxu0 }
 0x186   :  { %v61_v15 = vsel %vm60_vm2, %v56_v14, 0.0 }
 0x187   :  { %62 = vadd.xlane.f32.xlu1 %v61_v15 }
 0x18d   :  { %v58_v16 = vpop.f32.mrf.mxu0 }
 0x1fa   :  { %v63_v17 = vpop.xlane.xlu1 %62 }
 0x1fb   :  { %v64_v18 = vrot.slane %v63_v17, 4 }
 0x1fd   :  { %v65_v19 = vadd.f32 %v64_v18, %v63_v17  ;;  %v181_v17 = vld [vmem:[%s812_s4 + $0x28] sm:$0xf] }
 0x1fe   :  { %v197_v18 = vunpack.c.l.b16 %v181_v17 }
 0x1ff   :  { %v66_v20 = vrot.slane %v65_v19, 2 }
 0x201   :  { %v67_v21 = vadd.f32 %v66_v20, %v65_v19  ;;  %v201_v19 = vpack.c.b16 %v197_v18, %v197_v18 }
 0x203   :  { %v68_v22 = vrot.slane %v67_v21, 1  ;;  %v210_v20 = vsel %vm43_vm1, %v201_v19, 0 }
 0x204   :  { %216 = vmatpush.bf16.msra.mxu2 %v210_v20 }
 0x205   :  { %v69_v23 = vadd.f32 %v68_v22, %v67_v21  ;;  %v569_v21 = vld [vmem:[%s812_s4 + $0x20] sm:$0xff]  ;;  %v166_v22 = vpop.f32.mrf.mxu1 }
 0x207   :  { %575 = vpush %v69_v23 }
 0x208   :  { %217 = vmatpush.bf16.msra.mxu2 %v569_v21 }
 0x20c   :  { %218 = vmatpush.bf16.msra.mxu2 %v568_v24  ;;  %v598_v24 = vld [vmem:[%s814_s5 + $0x7] ss:$0 sm:$0xff] }
 0x20d   :  { %v168_v23 = vpop.f32.mrf.mxu1 }
 0x210   :  { %219 = vmatpush.bf16.msra.mxu2 %v567_v25 }
 0x238   :  { %s576_s2 = spop %575 }
 0x239   :  { %v71_v31 = vstv %s576_s2 }
 0x23a   :  { %v79_v32 = vmul.f32 %v78_v30, %v71_v31 }
 0x23c   :  { %v688_v33 = vsub.f32 %v56_v14, %v79_v32 }
 0x23e   :  { %v81_v34 = vmul.f32 %v688_v33, %v688_v33 }
 0x240   :  { %v82_v35 = vsel %vm60_vm2, %v81_v34, 0.0  ;;  %v570_v34 = vld [vmem:[%s812_s4 + $0x30] sm:$0xff] }
 0x241   :  { %83 = vadd.xlane.f32.xlu1 %v82_v35  ;;  %245 = vmatpush.bf16.msra.mxu3 %v570_v34  ;;  %v548_v35 = vld [vmem:[%s812_s4 + $0x48] sm:$0xf] }
 0x242   :  { %v549_v37 = vor.u32 %v572_v36, %v548_v35 }
 0x244   :  { %v316_v38 = vsel %vm314_vm13, %v549_v37, 0 }
 0x245   :  { %325 = vmatpush.bf16.msrb.mxu1 %v316_v38 }
 0x2b4   :  { %v84_v40 = vpop.xlane.xlu1 %83 }
 0x2b5   :  { %v85_v41 = vrot.slane %v84_v40, 4 }
 0x2b7   :  { %v86_v42 = vadd.f32 %v85_v41, %v84_v40 }
 0x2b9   :  { %v87_v43 = vrot.slane %v86_v42, 2 }
 0x2bb   :  { %v88_v44 = vadd.f32 %v87_v43, %v86_v42 }
 0x2bd   :  { %v89_v45 = vrot.slane %v88_v44, 1 }
 0x2bf   :  { %v90_v46 = vadd.f32 %v89_v45, %v88_v44  ;;  %v558_v45 = vld [vmem:[%s812_s4 + $0x50] sm:$0xf] }
 0x2c1   :  { %577 = vpush %v90_v46  ;;  %v573_v46 = vld [vmem:[%s812_s4 + $0x50] sm:$0x70] }
 0x2c2   :  { %v559_v49 = vor.u32 %v573_v46, %v558_v45 }
 0x2c4   :  { %v457_v52 = vand.u32 %v559_v49, %v455_v50 }
 0x2f2   :  { %s578_s30 = spop %577 }
 0x2f3   :  { %v92_v57 = vstv %s578_s30 }
 0x2f4   :  { %v100_v58 = vmul.f32 %v99_v56, %v92_v57 }
 0x2f6   :  { %611 = vrsqrt.f32 %v100_v58  ;;  %vm108_vm6 = vcmp.eq.f32.partialorder %v100_v58, inf  ;;  %v111_v2 = vand.u32 2147483648, %v100_v58  ;;  %vm110_vm7 = vcmp.eq.f32.partialorder %v100_v58, 0.0 }
 0x2fc   :  { %v612_v59 = vpop.eup %611 }
 0x2fd   :  { %v102_v60 = vmul.f32 %v612_v59, %v100_v58 }
 0x2ff   :  { %v103_v61 = vmul.f32 %v612_v59, %v102_v60 }
 0x301   :  { %v104_v62 = vmul.f32 0.5, %v103_v61  ;;  %v594_v61 = vld [vmem:[%s814_s5 + $0x3] ss:$0 sm:$0xff] }
 0x303   :  { %v105_v63 = vsub.f32 1.5, %v104_v62 }
 0x305   :  { %v106_v0 = vmul.f32 %v612_v59, %v105_v63  ;;  %v275_v59 = vld [vmem:[%s812_s4 + $0x38] sm:$0xf] }
 0x306   :  { %v282_v60 = vsel %vm43_vm1, %v275_v59, 0 }
 0x307   :  { %v107_v1 = vmul.f32 %v106_v0, %v100_v58  ;;  %291 = vmatpush.bf16.msrb.mxu3 %v282_v60 }
 0x309   :  { %v109_v3 = vsel %vm108_vm6, %v100_v58, %v107_v1 }
 0x30a   :  { %v112_v4 = vsel %vm110_vm7, %v111_v2, %v109_v3  ;;  %v571_v2 = vld [vmem:[%s812_s4 + $0x40] sm:$0xff] }
 0x30b   :  { %v113_v5 = vadd.f32 1e-06, %v112_v4  ;;  %347 = vmatpush.bf16.msrb.mxu2 %v571_v2  ;;  %v596_v3 = vld [vmem:[%s814_s5 + $0x6] ss:$0 sm:$0xff]  ;;  %v595_v4 = vld [vmem:[%s814_s5 + $0x4] ss:$0 sm:$0xff] }
 0x30c   :  { %372 = vrot.lane.b32.xlu0 %v596_v3, %s638_s13  ;;  %389 = vrot.lane.b32.xlu1 %v596_v3, %s639_s14 }
 0x30d   :  { %613 = vrcp.f32 %v113_v5  ;;  %v125_v9 = vand.u32 2147483648, %v113_v5  ;;  %v123_v11 = vand.u32 2147483647, %v113_v5  ;;  %vm119_vm9 = vweird.f32 %v113_v5 }
 0x30f   :  { %v126_v13 = vor.u32 1.1754944e-38, %v125_v9  ;;  %vm124_vm11 = vcmp.eq.f32.partialorder %v123_v11, 8.507059e+37  ;;  %v597_v9 = vld [vmem:[%s814_s5 + $0x5] ss:$0 sm:$0xff] }
 0x313   :  { %v614_v6 = vpop.eup %613 }
 0x314   :  { %v115_v7 = vmul.f32 %v614_v6, %v113_v5  ;;  %vm120_vm8 = vweird.f32 %v614_v6 }
 0x315   :  { %vm121_vm10 = vmor %vm119_vm9, %vm120_vm8 }
 0x316   :  { %v116_v8 = vsub.f32 1.0, %v115_v7 }
 0x318   :  { %v117_v10 = vmul.f32 %v614_v6, %v116_v8 }
 0x31a   :  { %v118_v12 = vadd.f32 %v614_v6, %v117_v10 }
 0x31c   :  { %v122_v14 = vsel %vm121_vm10, %v614_v6, %v118_v12 }
 0x31d   :  { %v127_v15 = vsel %vm124_vm11, %v126_v13, %v122_v14 }
 0x31e   :  { %v128_v16 = vmul.f32 %v127_v15, %v688_v33 }
 0x320   :  { %136 = vperm.xlu2 %588, %v128_v16  }
 0x37a   :  { %v137_v27 = vpop.permute.xlu2 %136 }
 0x37b   :  { %v140_v29 = vmul.f32 %v591_v26, %v137_v27 }
 0x37d   :  { %v167_v30 = vadd.f32 %v166_v22, %v140_v29 }
 0x37e   :  { %v373_v12 = vpop.permute.xlu0 %372  ;;  %v390_v16 = vpop.permute.xlu1 %389 }
 0x37f   :  { %v172_v31 = vadd.f32 %v592_v28, %v167_v30 }
 0x381   :  { %v173_v32 = vmax.f32 %v172_v31, 0.0 }
 0x383   :  { %v174_v33 = vpack.c.bf16 %v173_v32, %v173_v32 }
 0x385   :  { %538 = vmatmul.msk.bf16.vlgmr.msra.gmra.mxu2 %vm205_vm12, %v174_v33 }
 0x408   :  { %v221_v40 = vpop.f32.mrf.mxu2 }
 0x409   :  { %v222_v41 = vadd.f32 %v593_v39, %v221_v40 }
 0x40b   :  { %v225_v42 = vpack.c.bf16 %v222_v41, %v222_v41 }
 0x40d   :  { %303 = vrot.lane.b32.xlu2 %v225_v42, %s636_s24  ;;  %543 = vmatmul.msk.bf16.vlgmr.msra.gmra.mxu3 %vm234_vm14, %v225_v42 }
 0x410   :  { %v223_v43 = vpop.f32.mrf.mxu2 }
 0x467   :  { %v304_v44 = vpop.permute.xlu2 %303 }
 0x468   :  { %550 = vmatmul.msk.bf16.vlgmr.msrb.gmra.mxu1 %vm310_vm15, %v304_v44 }
 0x490   :  { %v247_v51 = vpop.f32.mrf.mxu3 }
 0x491   :  { %v252_v53 = vpack.c.bf16 %v247_v51, %v247_v51 }
 0x493   :  { %v259_v54 = vsel %vm43_vm1, %v252_v53, 0  ;;  %vm360_vm1 = vcmask 105472  }
 0x494   :  { %268 = vmatpush.bf16.msrb.mxu0 %v259_v54 }
 0x497   :  { %544 = vmatmul.msk.bf16.vlgmr.msrb.gmra.mxu0 %vm25_vm0, %v251_v55 }
 0x498   :  { %466 = vmatpush.bf16.msra.mxu0 %v457_v52  ;;  %v249_v56 = vpop.f32.mrf.mxu3 }
 0x4e5   :  { %v327_v57 = vpop.f32.mrf.mxu1 }
 0x4ed   :  { %v329_v58 = vpop.f32.mrf.mxu1 }
 0x514   :  { %v270_v62 = vpop.f32.mrf.mxu0 }
 0x515   :  { %v271_v63 = vadd.f32 %v594_v61, %v270_v62 }
 0x517   :  { %v274_v0 = vpack.c.bf16 %v271_v63, %v271_v63  ;;  %v574_v63 = vld [vmem:[%s812_s4 + $0x58] sm:$0xff] }
 0x518   :  { %494 = vmatpush.bf16.msra.mxu3 %v574_v63 }
 0x519   :  { %545 = vmatmul.msk.bf16.vlgmr.msrb.gmra.mxu3 %vm25_vm0, %v274_v0  ;;  %v599_v0 = vld [vmem:[%s814_s5 + $0x8] ss:$0 sm:$0xff] }
 0x51c   :  { %v272_v1 = vpop.f32.mrf.mxu0 }
 0x59c   :  { %v293_v5 = vpop.f32.mrf.mxu3 }
 0x59d   :  { %v294_v6 = vadd.f32 %v595_v4, %v293_v5 }
 0x59f   :  { %v297_v7 = vpack.c.bf16 %v294_v6, %v294_v6  ;;  %v600_v6 = vld [vmem:[%s814_s5 + $0x9] ss:$0 sm:$0xff] }
 0x5a1   :  { %555 = vmatmul.msk.bf16.vlgmr.msrb.gmra.mxu2 %vm234_vm14, %v297_v7 }
 0x5a4   :  { %v295_v8 = vpop.f32.mrf.mxu3 }
 0x624   :  { %v349_v10 = vpop.f32.mrf.mxu2 }
 0x625   :  { %v350_v11 = vadd.f32 %v349_v10, %v327_v57 }
 0x627   :  { %v770_v13 = vadd.f32 %v597_v9, %v350_v11  ;;  %v601_v9 = vld [vmem:[%s814_s5 + $0xa] ss:$0 sm:$0xff] }
 0x629   :  { %v375_v14 = vmul.f32 %v373_v12, %v770_v13  ;;  %v392_v17 = vmul.f32 %v390_v16, %v770_v13  ;;  %v359_v18 = vmul.f32 %v596_v3, %v770_v13 }
 0x62b   :  { %377 = vrot.lane.b32.xlu2 %v375_v14, %s640_s19  ;;  %v361_v19 = vsel %vm360_vm1, %v359_v18, 0.0  ;;  %v602_v14 = vld [vmem:[%s814_s5 + $0xb] ss:$0 sm:$0xff] }
 0x62c   :  { %v351_v15 = vpop.f32.mrf.mxu2 }
 0x633   :  { %394 = vrot.lane.b32.xlu2 %v392_v17, %s641_s20 }
 0x65c   :  { %362 = vadd.xlane.f32.xlu2 %v361_v19 }
 0x685   :  { %v378_v20 = vpop.permute.xlu2 %377 }
 0x686   :  { %v380_v21 = vsel %vm360_vm1, %v378_v20, 0.0 }
 0x687   :  { %381 = vadd.xlane.f32.xlu0 %v380_v21 }
 0x68d   :  { %v395_v22 = vpop.permute.xlu2 %394 }
 0x68e   :  { %v397_v23 = vsel %vm360_vm1, %v395_v22, 0.0 }
 0x68f   :  { %398 = vadd.xlane.f32.xlu1 %v397_v23 }
 0x6cf   :  { %v363_v25 = vpop.xlane.xlu2 %362 }
 0x6d0   :  { %v365_v26 = vadd.f32 %v598_v24, %v363_v25 }
 0x6d2   :  { %v366_v28 = vsub.f32 0.0, %v365_v26 }
 0x6d4   :  { %v367_v31 = vmul.f32 1.442695, %v366_v28 }
 0x6fa   :  { %v382_v27 = vpop.xlane.xlu0 %381 }
 0x6fb   :  { %v383_v29 = vadd.f32 %v598_v24, %v382_v27 }
 0x6fd   :  { %v384_v30 = vsub.f32 0.0, %v383_v29 }
 0x6ff   :  { %v385_v32 = vmul.f32 1.442695, %v384_v30 }
 0x701   :  { %615 = vpow2.f32 %v385_v32 }
 0x702   :  { %v399_v33 = vpop.xlane.xlu1 %398  ;;  %617 = vpow2.f32 %v367_v31 }
 0x703   :  { %v400_v34 = vadd.f32 %v598_v24, %v399_v33 }
 0x705   :  { %v401_v35 = vsub.f32 0.0, %v400_v34 }
 0x707   :  { %v616_v36 = vpop.eup %615  ;;  %v402_v37 = vmul.f32 1.442695, %v401_v35 }
 0x708   :  { %v618_v38 = vpop.eup %617  ;;  %v387_v39 = vadd.f32 1.0, %v616_v36 }
 0x709   :  { %619 = vpow2.f32 %v402_v37  ;;  %v369_v40 = vadd.f32 1.0, %v618_v38 }
 0x70a   :  { %621 = vrcp.f32 %v387_v39 }
 0x70b   :  { %623 = vrcp.f32 %v369_v40 }
 0x70f   :  { %v620_v41 = vpop.eup %619 }
 0x710   :  { %v404_v42 = vadd.f32 1.0, %v620_v41  ;;  %v622_v43 = vpop.eup %621 }
 0x711   :  { %v624_v44 = vpop.eup %623 }
 0x712   :  { %625 = vrcp.f32 %v404_v42  ;;  %v406_v45 = vadd.f32 %v624_v44, %v622_v43 }
 0x718   :  { %v626_v46 = vpop.eup %625 }
 0x719   :  { %v407_v47 = vadd.f32 %v626_v46, %v406_v45 }
 0x71b   :  { %627 = vrcp.f32 %v407_v47 }
 0x721   :  { %v628_v48 = vpop.eup %627 }
 0x722   :  { %v428_v49 = vmul.f32 %v628_v48, %v626_v46  ;;  %v416_v50 = vmul.f32 %v628_v48, %v622_v43  ;;  %v409_v51 = vmul.f32 %v628_v48, %v624_v44 }
 0x724   :  { %431 = vperm.xlu0 %589, %v428_v49   ;;  %419 = vperm.xlu2 %588, %v416_v50  }
 0x725   :  { %412 = vperm.xlu1 %590, %v409_v51  }
 0x77e   :  { %v420_v52 = vpop.permute.xlu2 %419 }
 0x77f   :  { %v422_v53 = vmul.f32 %v420_v52, %v770_v13 }
 0x781   :  { %424 = vrot.lane.b32.xlu2 %v422_v53, %s640_s19 }
 0x796   :  { %v432_v54 = vpop.permute.xlu0 %431 }
 0x797   :  { %v434_v55 = vmul.f32 %v432_v54, %v770_v13  ;;  %v413_v57 = vpop.permute.xlu1 %412 }
 0x798   :  { %v415_v58 = vmul.f32 %v413_v57, %v770_v13 }
 0x799   :  { %436 = vrot.lane.b32.xlu2 %v434_v55, %s641_s20 }
 0x7db   :  { %v425_v56 = vpop.permute.xlu2 %424 }
 0x7dc   :  { %v427_v59 = vadd.f32 %v425_v56, %v415_v58 }
 0x7f3   :  { %v437_v60 = vpop.permute.xlu2 %436 }
 0x7f4   :  { %v439_v61 = vadd.f32 %v437_v60, %v427_v59 }
 0x7f6   :  { %v440_v62 = vpack.c.bf16 %v439_v61, %v439_v61 }
 0x7f8   :  { %560 = vmatmul.msk.bf16.vlgmr.msra.gmra.mxu0 %vm360_vm1, %v440_v62 }
 0x875   :  { %v468_v1 = vpop.f32.mrf.mxu0 }
 0x876   :  { %v469_v2 = vadd.f32 %v599_v0, %v468_v1 }
 0x878   :  { %v472_v3 = vmax.f32 %v469_v2, 0.0 }
 0x87a   :  { %v473_v4 = vpack.c.bf16 %v472_v3, %v472_v3 }
 0x87c   :  { %565 = vmatmul.msk.bf16.vlgmr.msra.gmra.mxu3 %vm234_vm14, %v473_v4 }
 0x87d   :  { %v470_v5 = vpop.f32.mrf.mxu0 }
 0x8ff   :  { %v496_v7 = vpop.f32.mrf.mxu3 }
 0x900   :  { %v497_v8 = vadd.f32 %v600_v6, %v496_v7 }
 0x902   :  { %v500_v10 = vmax.f32 %v497_v8, 0.0 }
 0x904   :  { %v503_v11 = vmul.f32 %v601_v9, %v500_v10 }
 0x906   :  { %v504_v12 = vsel %vm25_vm0, %v503_v11, 0.0 }
 0x907   :  { %v498_v13 = vpop.f32.mrf.mxu3  ;;  %505 = vadd.xlane.f32.xlu1 %v504_v12 }
 0x97a   :  { %v506_v15 = vpop.xlane.xlu1 %505 }
 0x97b   :  { %v509_v16 = vadd.f32 %v602_v14, %v506_v15 }
 0x97d   :  { %v510_v17 = vsub.f32 0.0, %v509_v16 }
 0x97f   :  { %v511_v18 = vmul.f32 1.442695, %v510_v17 }
 0x981   :  { %629 = vpow2.f32 %v511_v18 }
 0x987   :  { %v630_v19 = vpop.eup %629 }
 0x988   :  { %v513_v20 = vadd.f32 1.0, %v630_v19 }
 0x98a   :  { %631 = vrcp.f32 %v513_v20 }
 0x990   :  { %v632_v21 = vpop.eup %631 }
 0x991   :  { %515 = vst.msk [vmem:[%s816_s6] sm:$0xff] %vm60_vm2, %v632_v21 }

</bundles_post_ra>
